<compile_context>
chip_gen: v7x
topology: tpu7x:2x2x1
jax: 0.10.0
libtpu: 0.0.40
codegen_flags: <defaults>
</compile_context>

<pallas_src>
import functools

import jax
import jax.numpy as jnp
from jax import lax
from jax.experimental import pallas as pl
from jax.experimental.pallas import tpu as pltpu

LANE = 128


# ------------------------------ small helpers -------------------------------

def _round_up(x, m):
    return ((x + m - 1) // m) * m


def _pad_to(a, shape):
    pads = [(0, s - d) for d, s in zip(a.shape, shape)]
    return jnp.pad(a, pads)


def im2col(x, K=3, pad=1):
    """NCHW image -> (B, H*W, C*K*K) patch matrix ((c, ky, kx) ordering, like PyTorch)."""
    B, C, H, W = x.shape
    xp = jnp.pad(x, ((0, 0), (0, 0), (pad, pad), (pad, pad)))
    cols = []
    for ky in range(K):
        for kx in range(K):
            cols.append(xp[:, :, ky:ky + H, kx:kx + W])        # (B, C, H, W)
    patches = jnp.stack(cols, axis=2)                          # (B, C, K*K, H, W)
    patches = patches.transpose(0, 3, 4, 1, 2)                 # (B, H, W, C, K*K)
    return patches.reshape(B, H * W, C * K * K)


# ------------------------------ Pallas kernel --------------------------------

def _fused_byol_kernel(patches_ref, w_conv_ref, b_conv_ref,
                       w1_ref, b1_ref, w2_ref, b2_ref,
                       out_ref, acc_ref, *, hw, tile_r):
    """conv(im2col matmul)+ReLU+global-avg-pool partial sums; MLP at finalize."""
    r = pl.program_id(1)

    @pl.when(r == 0)
    def _init():
        acc_ref[...] = jnp.zeros_like(acc_ref)

    tb, tr, ckk = patches_ref.shape
    # Conv as one MXU matmul: bf16 inputs, f32 accumulation.
    p = patches_ref[...].reshape(tb * tr, ckk)                      # bf16
    y = jnp.dot(p, w_conv_ref[...], preferred_element_type=jnp.float32)
    # Bias lives in VMEM as a (1, F_pad) block; broadcast fuses into the add.
    y = jnp.maximum(y + b_conv_ref[...], 0.0)                       # f32 VPU
    y = y.reshape(tb, tr, -1)                                       # (tb, tr, F_pad)

    # Zero rows that fall in the HW padding region before pooling
    # (padded zero patch rows would otherwise contribute relu(bias)).
    row = r * tile_r + lax.broadcasted_iota(jnp.int32, (tr, 1), 0)
    y = jnp.where((row < hw)[None, :, :], y, 0.0)

    acc_ref[...] += jnp.sum(y, axis=1)                              # partial GAP sum

    @pl.when(r == pl.num_programs(1) - 1)
    def _finalize():
        rep = acc_ref[...] * (1.0 / hw)                             # (tb, F_pad) f32
        h = jnp.dot(rep.astype(jnp.bfloat16), w1_ref[...],
                    preferred_element_type=jnp.float32) + b1_ref[...]
        h = jnp.maximum(h, 0.0)
        out_ref[...] = (jnp.dot(h.astype(jnp.bfloat16), w2_ref[...],
                                preferred_element_type=jnp.float32)
                        + b2_ref[...])                              # lane-dense store


# ------------------------------ JAX wrapper ----------------------------------

def net_wrapper_forward(x, params, *, tile_rows=128, tile_batch=8):
    """x: (B, C, H, W) float32 NCHW, params in PyTorch layouts -> (B, PROJ)."""
    w_conv, b_conv, w1, b1, w2, b2 = params
    B, C, H, W = x.shape
    Fdim, _, K, _ = w_conv.shape
    HID = w1.shape[0]
    PROJ = w2.shape[0]
    HW = H * W
    CKK = C * K * K

    F_p = _round_up(Fdim, LANE)
    HID_p = _round_up(HID, LANE)
    PROJ_p = _round_up(PROJ, LANE)

    TILE_B = min(B, tile_batch)
    TILE_R = tile_rows if HW >= tile_rows else HW                  # multiple of 8 or full
    nb = pl.cdiv(B, TILE_B)
    nr = pl.cdiv(HW, TILE_R)
    B_pad = nb * TILE_B
    HW_pad = nr * TILE_R

    # Streamed bf16 im2col patch matrix (dominant HBM stream).
    patches = im2col(x, K=K, pad=(K - 1) // 2)                     # (B, HW, CKK) f32
    patches = _pad_to(patches, (B_pad, HW_pad, CKK)).astype(jnp.bfloat16)

    # Weights: math layout, output dims zero-padded to 128 lanes, bf16 for MXU.
    w_mat_p = _pad_to(w_conv.reshape(Fdim, CKK).T, (CKK, F_p)).astype(jnp.bfloat16)
    b_conv_p = _pad_to(b_conv.reshape(1, Fdim), (1, F_p)).astype(jnp.float32)
    w1_p = _pad_to(w1.T, (F_p, HID_p)).astype(jnp.bfloat16)        # (F, HID) padded
    b1_p = _pad_to(b1.reshape(1, HID), (1, HID_p)).astype(jnp.float32)
    w2_p = _pad_to(w2.T, (HID_p, PROJ_p)).astype(jnp.bfloat16)     # (HID, PROJ) padded
    b2_p = _pad_to(b2.reshape(1, PROJ), (1, PROJ_p)).astype(jnp.float32)

    flops = (2 * B_pad * HW_pad * CKK * F_p
             + 2 * B_pad * (F_p * HID_p + HID_p * PROJ_p))
    bytes_accessed = (B_pad * HW_pad * CKK * 2                      # patches (bf16)
                      + (CKK * F_p + F_p * HID_p + HID_p * PROJ_p) * 2
                      + (F_p + HID_p + PROJ_p) * 4
                      + B_pad * PROJ_p * 4)

    kernel = functools.partial(_fused_byol_kernel, hw=HW, tile_r=TILE_R)

    out_p = pl.pallas_call(
        kernel,
        out_shape=jax.ShapeDtypeStruct((B_pad, PROJ_p), jnp.float32),
        grid=(nb, nr),
        in_specs=[
            pl.BlockSpec((TILE_B, TILE_R, CKK), lambda b, r: (b, r, 0)),
            pl.BlockSpec((CKK, F_p), lambda b, r: (0, 0)),
            pl.BlockSpec((1, F_p), lambda b, r: (0, 0)),
            pl.BlockSpec((F_p, HID_p), lambda b, r: (0, 0)),
            pl.BlockSpec((1, HID_p), lambda b, r: (0, 0)),
            pl.BlockSpec((HID_p, PROJ_p), lambda b, r: (0, 0)),
            pl.BlockSpec((1, PROJ_p), lambda b, r: (0, 0)),
        ],
        out_specs=pl.BlockSpec((TILE_B, PROJ_p), lambda b, r: (b, 0)),
        scratch_shapes=[pltpu.VMEM((TILE_B, F_p), jnp.float32)],
        compiler_params=pltpu.CompilerParams(
            dimension_semantics=("parallel", "arbitrary")),
        cost_estimate=pl.CostEstimate(flops=flops, transcendentals=0,
                                      bytes_accessed=bytes_accessed),
    )(patches, w_mat_p, b_conv_p, w1_p, b1_p, w2_p, b2_p)

    return out_p[:B, :PROJ]


# ------------------------------ reference ------------------------------------

def reference_forward(x, params):
    """Pure-JAX reference (bf16 matmul inputs, f32 accumulate — matches kernel)."""
    w_conv, b_conv, w1, b1, w2, b2 = params
    Fdim, C, K, _ = w_conv.shape

    def bf(a):  # emulate bf16 MXU inputs
        return a.astype(jnp.bfloat16).astype(jnp.float32)

    patches = im2col(x, K=K, pad=(K - 1) // 2)
    w_mat = w_conv.reshape(Fdim, -1).T
    y = jnp.einsum('bpc,cf->bpf', bf(patches), bf(w_mat)) + b_conv[None, None, :]
    y = jnp.maximum(y, 0.0)
    rep = jnp.mean(y, axis=1)
    h = jnp.maximum(bf(rep) @ bf(w1.T) + b1[None, :], 0.0)
    return bf(h) @ bf(w2.T) + b2[None, :]


# ---------------------------------- main --------------------------------------

if __name__ == "__main__":
    B, C, H, W = 2, 4, 16, 16        # input image (NCHW)
    FEAT, HID, PROJ = 32, 32, 16     # encoder feat, projector hidden, projection dim
    K = 3

    key = jax.random.PRNGKey(0)
    k_x, k_wc, k_bc, k_w1, k_b1, k_w2, k_b2 = jax.random.split(key, 7)

    x = jax.random.normal(k_x, (B, C, H, W), dtype=jnp.float32)

    params = (  # PyTorch parameter layouts
        0.1 * jax.random.normal(k_wc, (FEAT, C, K, K), dtype=jnp.float32),  # conv.weight
        0.1 * jax.random.normal(k_bc, (FEAT,), dtype=jnp.float32),          # conv.bias
        0.1 * jax.random.normal(k_w1, (HID, FEAT), dtype=jnp.float32),      # lin1.weight
        0.1 * jax.random.normal(k_b1, (HID,), dtype=jnp.float32),           # lin1.bias
        0.1 * jax.random.normal(k_w2, (PROJ, HID), dtype=jnp.float32),      # lin2.weight
        0.1 * jax.random.normal(k_b2, (PROJ,), dtype=jnp.float32),          # lin2.bias
    )

    out = jax.block_until_ready(net_wrapper_forward(x, params))
    ref = jax.block_until_ready(reference_forward(x, params))

    assert out.shape == (B, PROJ), out.shape
    max_diff = float(jnp.max(jnp.abs(out - ref)))
    assert jnp.allclose(out, ref, atol=2e-3, rtol=2e-3), f"mismatch vs reference: {max_diff}"
    print("KERNEL_OK")
</pallas_src>

<mosaic_0001>
module attributes {stable_mosaic.version = 11 : i64} {
  func.func @_fused_byol_kernel(%arg0: i32, %arg1: i32, %arg2: memref<2x128x36xbf16, #tpu.memory_space<vmem>>, %arg3: memref<36x128xbf16, #tpu.memory_space<vmem>>, %arg4: memref<1x128xf32, #tpu.memory_space<vmem>>, %arg5: memref<128x128xbf16, #tpu.memory_space<vmem>>, %arg6: memref<1x128xf32, #tpu.memory_space<vmem>>, %arg7: memref<128x128xbf16, #tpu.memory_space<vmem>>, %arg8: memref<1x128xf32, #tpu.memory_space<vmem>>, %arg9: memref<2x128xf32, #tpu.memory_space<vmem>>, %arg10: memref<2x128xf32, #tpu.memory_space<vmem>>) attributes {dimension_semantics = [#tpu.dimension_semantics<parallel>, #tpu.dimension_semantics<arbitrary>], iteration_bounds = array<i64: 1, 2>, scalar_prefetch = 0 : i64, scratch_operands = 1 : i64, tpu.core_type = #tpu.core_type<tc>, window_params = [{transform_indices = @transform_0, window_bounds = array<i64: 2, 128, 36>}, {pipeline_mode = #tpu.pipeline_mode<synchronous>, transform_indices = @transform_1, window_bounds = array<i64: 36, 128>}, {pipeline_mode = #tpu.pipeline_mode<synchronous>, transform_indices = @transform_2, window_bounds = array<i64: 1, 128>}, {pipeline_mode = #tpu.pipeline_mode<synchronous>, transform_indices = @transform_3, window_bounds = array<i64: 128, 128>}, {pipeline_mode = #tpu.pipeline_mode<synchronous>, transform_indices = @transform_4, window_bounds = array<i64: 1, 128>}, {pipeline_mode = #tpu.pipeline_mode<synchronous>, transform_indices = @transform_5, window_bounds = array<i64: 128, 128>}, {pipeline_mode = #tpu.pipeline_mode<synchronous>, transform_indices = @transform_6, window_bounds = array<i64: 1, 128>}, {transform_indices = @transform_7, window_bounds = array<i64: 2, 128>}]} {
    %c0_i32 = arith.constant 0 : i32
    %0 = arith.cmpi eq, %arg1, %c0_i32 : i32
    %1 = arith.extui %0 : i1 to i32
    %c0_i32_0 = arith.constant 0 : i32
    %2 = arith.cmpi ne, %1, %c0_i32_0 : i32
    scf.if %2 {
      %cst_15 = arith.constant 0.000000e+00 : f32
      %31 = vector.broadcast %cst_15 : f32 to vector<2x128xf32>
      %c0_16 = arith.constant 0 : index
      %c0_17 = arith.constant 0 : index
      %32 = vector.load %arg10[%c0_16, %c0_17] : memref<2x128xf32, #tpu.memory_space<vmem>>, vector<2x128xf32>
      tpu.vector_store %arg10[%c0_16, %c0_17], %31 {strides = array<i32>} : memref<2x128xf32, #tpu.memory_space<vmem>>, vector<2x128xf32>,
    } else {
    }
    %c0 = arith.constant 0 : index
    %c0_1 = arith.constant 0 : index
    %c0_2 = arith.constant 0 : index
    %3 = vector.load %arg2[%c0, %c0_1, %c0_2] : memref<2x128x36xbf16, #tpu.memory_space<vmem>>, vector<2x128x36xbf16>
    %4 = vector.shape_cast %3 : vector<2x128x36xbf16> to vector<256x36xbf16>
    %c0_3 = arith.constant 0 : index
    %c0_4 = arith.constant 0 : index
    %5 = vector.load %arg3[%c0_3, %c0_4] : memref<36x128xbf16, #tpu.memory_space<vmem>>, vector<36x128xbf16>
    %cst = arith.constant dense<0.000000e+00> : vector<256x128xf32>
    %6 = tpu.matmul %4, %5, %cst {dimension_numbers = #tpu.dot_dimension_numbers<[1], [0], [0], [1], [0, 0, 1, 1], [], []>} : vector<256x36xbf16>, vector<36x128xbf16>, vector<256x128xf32> -> vector<256x128xf32>
    %c0_5 = arith.constant 0 : index
    %c0_6 = arith.constant 0 : index
    %7 = vector.load %arg4[%c0_5, %c0_6] : memref<1x128xf32, #tpu.memory_space<vmem>>, vector<1x128xf32>
    %8 = vector.broadcast %7 : vector<1x128xf32> to vector<256x128xf32>
    %9 = arith.addf %6, %8 : vector<256x128xf32>
    %cst_7 = arith.constant 0.000000e+00 : f32
    %10 = vector.broadcast %cst_7 : f32 to vector<256x128xf32>
    %11 = arith.maximumf %9, %10 : vector<256x128xf32>
    %12 = vector.shape_cast %11 : vector<256x128xf32> to vector<2x128x128xf32>
    %c128_i32 = arith.constant 128 : i32
    %13 = arith.muli %arg1, %c128_i32 : i32
    %14 = tpu.iota {dimensions = array<i32: 0>} : vector<128x1xi32>
    %15 = vector.broadcast %13 : i32 to vector<128x1xi32>
    %16 = arith.addi %15, %14 : vector<128x1xi32>
    %c256_i32 = arith.constant 256 : i32
    %17 = vector.broadcast %c256_i32 : i32 to vector<128x1xi32>
    %18 = arith.cmpi slt, %16, %17 : vector<128x1xi32>
    %19 = vector.shape_cast %18 : vector<128x1xi1> to vector<1x128x1xi1>
    %cst_8 = arith.constant 0.000000e+00 : f32
    %20 = vector.shape_cast %19 : vector<1x128x1xi1> to vector<1x128x1xi1>
    %21 = vector.broadcast %20 : vector<1x128x1xi1> to vector<2x128x128xi1>
    %22 = vector.broadcast %cst_8 : f32 to vector<2x128x128xf32>
    %23 = arith.select %21, %12, %22 : vector<2x128x128xi1>, vector<2x128x128xf32>
    %c0_9 = arith.constant 0 : index
    %c0_10 = arith.constant 0 : index
    %24 = vector.load %arg10[%c0_9, %c0_10] : memref<2x128xf32, #tpu.memory_space<vmem>>, vector<2x128xf32>
    %cst_11 = arith.constant dense<0.000000e+00> : vector<2x128xf32>
    %25 = vector.multi_reduction <add>, %23, %cst_11 [1] : vector<2x128x128xf32> to vector<2x128xf32>
    %26 = arith.addf %24, %25 : vector<2x128xf32>
    %c0_12 = arith.constant 0 : index
    %c0_13 = arith.constant 0 : index
    %27 = vector.load %arg10[%c0_12, %c0_13] : memref<2x128xf32, #tpu.memory_space<vmem>>, vector<2x128xf32>
    tpu.vector_store %arg10[%c0_12, %c0_13], %26 {strides = array<i32>} : memref<2x128xf32, #tpu.memory_space<vmem>>, vector<2x128xf32>,
    %c1_i32 = arith.constant 1 : i32
    %28 = arith.cmpi eq, %arg1, %c1_i32 : i32
    %29 = arith.extui %28 : i1 to i32
    %c0_i32_14 = arith.constant 0 : i32
    %30 = arith.cmpi ne, %29, %c0_i32_14 : i32
    scf.if %30 {
      %c0_15 = arith.constant 0 : index
      %c0_16 = arith.constant 0 : index
      %31 = vector.load %arg10[%c0_15, %c0_16] : memref<2x128xf32, #tpu.memory_space<vmem>>, vector<2x128xf32>
      %cst_17 = arith.constant 3.906250e-03 : f32
      %32 = vector.broadcast %cst_17 : f32 to vector<2x128xf32>
      %33 = arith.mulf %31, %32 : vector<2x128xf32>
      %34 = arith.truncf %33 : vector<2x128xf32> to vector<2x128xbf16>
      %c0_18 = arith.constant 0 : index
      %c0_19 = arith.constant 0 : index
      %35 = vector.load %arg5[%c0_18, %c0_19] : memref<128x128xbf16, #tpu.memory_space<vmem>>, vector<128x128xbf16>
      %cst_20 = arith.constant dense<0.000000e+00> : vector<2x128xf32>
      %36 = tpu.matmul %34, %35, %cst_20 {dimension_numbers = #tpu.dot_dimension_numbers<[1], [0], [0], [1], [0, 0, 1, 1], [], []>} : vector<2x128xbf16>, vector<128x128xbf16>, vector<2x128xf32> -> vector<2x128xf32>
      %c0_21 = arith.constant 0 : index
      %c0_22 = arith.constant 0 : index
      %37 = vector.load %arg6[%c0_21, %c0_22] : memref<1x128xf32, #tpu.memory_space<vmem>>, vector<1x128xf32>
      %38 = vector.broadcast %37 : vector<1x128xf32> to vector<2x128xf32>
      %39 = arith.addf %36, %38 : vector<2x128xf32>
      %cst_23 = arith.constant 0.000000e+00 : f32
      %40 = vector.broadcast %cst_23 : f32 to vector<2x128xf32>
      %41 = arith.maximumf %39, %40 : vector<2x128xf32>
      %42 = arith.truncf %41 : vector<2x128xf32> to vector<2x128xbf16>
      %c0_24 = arith.constant 0 : index
      %c0_25 = arith.constant 0 : index
      %43 = vector.load %arg7[%c0_24, %c0_25] : memref<128x128xbf16, #tpu.memory_space<vmem>>, vector<128x128xbf16>
      %cst_26 = arith.constant dense<0.000000e+00> : vector<2x128xf32>
      %44 = tpu.matmul %42, %43, %cst_26 {dimension_numbers = #tpu.dot_dimension_numbers<[1], [0], [0], [1], [0, 0, 1, 1], [], []>} : vector<2x128xbf16>, vector<128x128xbf16>, vector<2x128xf32> -> vector<2x128xf32>
      %c0_27 = arith.constant 0 : index
      %c0_28 = arith.constant 0 : index
      %45 = vector.load %arg8[%c0_27, %c0_28] : memref<1x128xf32, #tpu.memory_space<vmem>>, vector<1x128xf32>
      %46 = vector.broadcast %45 : vector<1x128xf32> to vector<2x128xf32>
      %47 = arith.addf %44, %46 : vector<2x128xf32>
      %c0_29 = arith.constant 0 : index
      %c0_30 = arith.constant 0 : index
      %48 = vector.load %arg9[%c0_29, %c0_30] : memref<2x128xf32, #tpu.memory_space<vmem>>, vector<2x128xf32>
      tpu.vector_store %arg9[%c0_29, %c0_30], %47 {strides = array<i32>} : memref<2x128xf32, #tpu.memory_space<vmem>>, vector<2x128xf32>,
    } else {
    }
    return
  }
  func.func @transform_0(%arg0: i32, %arg1: i32) -> (i32, i32, i32) {
    %c0_i32 = arith.constant 0 : i32
    %c0_i32_0 = arith.constant 0 : i32
    return %arg0, %arg1, %c0_i32 : i32, i32, i32
  }
  func.func @transform_1(%arg0: i32, %arg1: i32) -> (i32, i32) {
    %c0_i32 = arith.constant 0 : i32
    %c0_i32_0 = arith.constant 0 : i32
    %c0_i32_1 = arith.constant 0 : i32
    return %c0_i32, %c0_i32_0 : i32, i32
  }
  func.func @transform_2(%arg0: i32, %arg1: i32) -> (i32, i32) {
    %c0_i32 = arith.constant 0 : i32
    %c0_i32_0 = arith.constant 0 : i32
    %c0_i32_1 = arith.constant 0 : i32
    return %c0_i32, %c0_i32_0 : i32, i32
  }
  func.func @transform_3(%arg0: i32, %arg1: i32) -> (i32, i32) {
    %c0_i32 = arith.constant 0 : i32
    %c0_i32_0 = arith.constant 0 : i32
    %c0_i32_1 = arith.constant 0 : i32
    return %c0_i32, %c0_i32_0 : i32, i32
  }
  func.func @transform_4(%arg0: i32, %arg1: i32) -> (i32, i32) {
    %c0_i32 = arith.constant 0 : i32
    %c0_i32_0 = arith.constant 0 : i32
    %c0_i32_1 = arith.constant 0 : i32
    return %c0_i32, %c0_i32_0 : i32, i32
  }
  func.func @transform_5(%arg0: i32, %arg1: i32) -> (i32, i32) {
    %c0_i32 = arith.constant 0 : i32
    %c0_i32_0 = arith.constant 0 : i32
    %c0_i32_1 = arith.constant 0 : i32
    return %c0_i32, %c0_i32_0 : i32, i32
  }
  func.func @transform_6(%arg0: i32, %arg1: i32) -> (i32, i32) {
    %c0_i32 = arith.constant 0 : i32
    %c0_i32_0 = arith.constant 0 : i32
    %c0_i32_1 = arith.constant 0 : i32
    return %c0_i32, %c0_i32_0 : i32, i32
  }
  func.func @transform_7(%arg0: i32, %arg1: i32) -> (i32, i32) {
    %c0_i32 = arith.constant 0 : i32
    %c0_i32_0 = arith.constant 0 : i32
    return %arg0, %c0_i32 : i32, i32
  }
}

</mosaic_0001>

<bundles_post_ra>
// kernel: tpu_custom_call.1
= control target key start
LH: loop header
LB: loop body
LE: loop exit
PB: predicated region body
PF: predicated region fallthrough
CT: control target
= control target key end

     0   :  { %12 = vsyncpa [#allocation5], 0  ;;  %s1703_s24 = smov 0   ;;  %s1705_s25 = smov 0   ;;  %s2071_s0 = inlined_call_operand.vmem [shape: bf16[2,256,36], index: 0, kind: input, shape index: {}]   ;;  %s2072_s1 = inlined_call_operand.vmem [shape: bf16[36,128], index: 1, kind: input, shape index: {}]   ;;  %s2073_s2 = inlined_call_operand.vmem [shape: f32[1,128], index: 2, kind: input, shape index: {}]   ;;  %s2074_s3 = inlined_call_operand.vmem [shape: bf16[128,128], index: 3, kind: input, shape index: {}]   ;;  %s2075_s4 = inlined_call_operand.vmem [shape: f32[1,128], index: 4, kind: input, shape index: {}]   ;;  %s2076_s5 = inlined_call_operand.vmem [shape: bf16[128,128], index: 5, kind: input, shape index: {}]   ;;  %s2077_s6 = inlined_call_operand.vmem [shape: f32[1,128], index: 6, kind: input, shape index: {}]   ;;  %s2078_s7 = inlined_call_operand.hbm [shape: f32[2,128], index: 7, kind: output, shape index: {}]  }
   0x1   :  { %s1707_s26 = smov 0   ;;  %s1709_s27 = smov 0  }
   0x2   :  { %s1711_s28 = smov 0  }
   0x3 LB: > { %s1311_s29 = sadd.s32 4294967295, %s1657_s28   ;;  %s27_s30 = sadd.s32 1, %s1653_s27  ;;  %s1657_s28 = sphi %s1711_s28, %s18_s28   ;;  %s1653_s27 = sphi %s1709_s27, %s2083_s27   ;;  %s1649_s26 = sphi %s1707_s26, %s2082_s26   ;;  %s1645_s25 = sphi %s1705_s25, %s2081_s25   ;;  %s1641_s24 = sphi %s1703_s24, %s2080_s24  }
   0x4   : > { %p28_p0 = scmp.ge.s32.totalorder %s27_s30, 2  ;;  %p46_p1 = scmp.ne.s32.totalorder %s1645_s25, %s1641_s24 }
   0x5   : > { %p47_p2 = scmp.eq.s32.totalorder %s1657_s28, 0  ;;  %s39_s9 = sadd.s32 1, %s1645_s25 }
   0x6   : > { %s2085_s30 = smov (%p28_p0, %s27_s30), 0  ;;  %p1313_p5 = scmp.ge.s32.totalorder %s1657_s28, 2 }
   0x7   : > { %p48_p3 = por %p47_p2, %p46_p1  ;;  %s35_s8 = ssub.s32 %s1653_s27, %s2085_s30 }
   0x8   : > { %p37_p4 = scmp.eq.s32.totalorder %s35_s8, 0  ;;  %242 = sbr.rel (%p1313_p5) target bundleno = 27 (0x1b), region = 40 }
   0xa   : > { %s1739_s10 = scalar_select %p37_p4, %s1645_s25, %s39_s9  }
   0xf   : > { %245 = sbr.rel (!%p48_p3) target bundleno = 27 (0x1b), region = 44  ;;  %s247_s11 = sand.u32 (%p48_p3), 1, %s1645_s25  }
  0x10   : > { %s1380_s12 = sshll.u32 (%p48_p3), %s1653_s27, 6  ;;  %s1314_s13 = sshll.u32 (%p48_p3), %s247_s11, 7 }
  0x11   : > { %s1747_s16 = scalar_lea.vmem (%p48_p3), %s2071_s0, %s1380_s12  ;;  %s249_s17 = scalar_lea.vmem (%p48_p3), [#allocation3], %s1314_s13 }
  0x12   : > { %v271_v0 = vld [vmem:[%s1747_s16] sm:$0xff] (%p48_p3)   ;;  %v275_v1 = vld [vmem:[%s1747_s16 + $0x8] sm:$0xff] (%p48_p3)   ;;  %v279_v2 = vld [vmem:[%s1747_s16 + $0x10] sm:$0xff] (%p48_p3)  }
  0x13   : > { %272 = vst [vmem:[%s249_s17] sm:$0xff] (%p48_p3), %v271_v0   ;;  %276 = vst [vmem:[%s249_s17 + $0x8] sm:$0xff] (%p48_p3), %v275_v1   ;;  %v283_v3 = vld [vmem:[%s1747_s16 + $0x18] sm:$0xff] (%p48_p3)   ;;  %v287_v4 = vld [vmem:[%s1747_s16 + $0x20] sm:$0xff] (%p48_p3)  }
  0x14   : > { %280 = vst [vmem:[%s249_s17 + $0x10] sm:$0xff] (%p48_p3), %v279_v2   ;;  %v291_v5 = vld [vmem:[%s1747_s16 + $0x28] sm:$0xff] (%p48_p3)   ;;  %284 = vst [vmem:[%s249_s17 + $0x18] sm:$0xff] (%p48_p3), %v283_v3   ;;  %v295_v6 = vld [vmem:[%s1747_s16 + $0x30] sm:$0xff] (%p48_p3)  }
  0x15   : > { %288 = vst [vmem:[%s249_s17 + $0x20] sm:$0xff] (%p48_p3), %v287_v4   ;;  %292 = vst [vmem:[%s249_s17 + $0x28] sm:$0xff] (%p48_p3), %v291_v5   ;;  %v299_v7 = vld [vmem:[%s1747_s16 + $0x38] sm:$0xff] (%p48_p3)   ;;  %v303_v8 = vld [vmem:[%s1747_s16 + $0x80] sm:$0xff] (%p48_p3)  }
  0x16   : > { %296 = vst [vmem:[%s249_s17 + $0x30] sm:$0xff] %v295_v6   ;;  %300 = vst [vmem:[%s249_s17 + $0x38] sm:$0xff] %v299_v7   ;;  %v307_v9 = vld [vmem:[%s1747_s16 + $0x88] sm:$0xff]   ;;  %v311_v10 = vld [vmem:[%s1747_s16 + $0x90] sm:$0xff]  }
  0x17   : > { %304 = vst [vmem:[%s249_s17 + $0x40] sm:$0xff] %v303_v8   ;;  %v315_v11 = vld [vmem:[%s1747_s16 + $0x98] sm:$0xff]   ;;  %308 = vst [vmem:[%s249_s17 + $0x48] sm:$0xff] %v307_v9   ;;  %v319_v12 = vld [vmem:[%s1747_s16 + $0xa0] sm:$0xff]  }
  0x18   : > { %312 = vst [vmem:[%s249_s17 + $0x50] sm:$0xff] %v311_v10   ;;  %316 = vst [vmem:[%s249_s17 + $0x58] sm:$0xff] %v315_v11   ;;  %v323_v13 = vld [vmem:[%s1747_s16 + $0xa8] sm:$0xff]   ;;  %v327_v14 = vld [vmem:[%s1747_s16 + $0xb0] sm:$0xff]  }
  0x19   : > { %320 = vst [vmem:[%s249_s17 + $0x60] sm:$0xff] %v319_v12   ;;  %324 = vst [vmem:[%s249_s17 + $0x68] sm:$0xff] %v323_v13   ;;  %v331_v15 = vld [vmem:[%s1747_s16 + $0xb8] sm:$0xff]  }
  0x1a   : > { %328 = vst [vmem:[%s249_s17 + $0x70] sm:$0xff] %v327_v14   ;;  %332 = vst [vmem:[%s249_s17 + $0x78] sm:$0xff] %v331_v15  }
  0x1b PF: > { %p1317_p6 = scmp.ge.s32.totalorder %s1657_s28, 1  ;;  %p420_p7 = scmp.lt.s32.totalorder %s1657_s28, 3 }
  0x1d   : > { %p421_p8 = pnand %p1317_p6, %p420_p7 }
  0x1e   : > { %s427_s18 = sand.u32 (!%p421_p8), 1, %s1641_s24   ;;  %p1319_p9 = scmp.ne.s32.totalorder (!%p421_p8), %s1649_s26, 0 }
  0x1f   : > { %424 = sbr.rel (%p421_p8) target bundleno = 795 (0x31b), region = 85  ;;  %s1318_s19 = sshll.u32 (!%p421_p8), %s427_s18, 7 }
  0x20   : > { %s1768_s20 = scalar_lea.vmem (!%p421_p8), [#allocation3], %s1318_s19 }
  0x26   : > { %459 = sbr.rel (%p1319_p9) target bundleno = 45 (0x2d), region = 93  ;;  %v1659_v16 = vmov (!%p1319_p9), 0.0  }
  0x27   : > { %460 = vst [vmem:[#allocation2] sm:$0x3] (!%p1319_p9), %v1659_v16 }
  0x2d PF: > { %v1554_v17 = vld [vmem:[%s2072_s1] sm:$0xff]   ;;  %v1555_v18 = vld [vmem:[%s2072_s1 + $0x8] sm:$0xff]   ;;  %vm600_vm0 = vcmask 293888   ;;  %v1556_v19 = vld [vmem:[%s2072_s1 + $0x10] ss:$0 sps:$4 sm:$0x33]   ;;  %v847_v37 = vlaneseq }
  0x2e   : > { %1418 = vmatprep.subr.bf16.mxu0 %v1554_v17  ;;  %1496 = vmatprep.subr.bf16.mxu1 %v1554_v17  ;;  %v1557_v20 = vld [vmem:[%s1768_s20] sm:$0xff]   ;;  %vm649_vm1 = vcmask 1041408   ;;  %v1559_v23 = vld [vmem:[%s1768_s20 + $0x8] sm:$0xff]   ;;  %v1561_v25 = vld [vmem:[%s1768_s20 + $0x10] sm:$0xff]   ;;  %s1356_s11 = sshll.u32 %s1649_s26, 7  ;;  %p1357_p10 = scmp.ne.s32.totalorder %s1649_s26, 1 }
  0x2f   : > { %1419 = vmatpush3.bf16.msra.mxu0 %v1554_v17  ;;  %1499 = vmatpush3.bf16.msra.mxu1 %v1554_v17  ;;  %v1558_v21 = vld [vmem:[%s1768_s20 + $0x40] sm:$0xff]   ;;  %v651_v22 = vsel %vm649_vm1, %v1556_v19, 0  ;;  %v1560_v24 = vld [vmem:[%s1768_s20 + $0x48] sm:$0xff]   ;;  %v1562_v26 = vld [vmem:[%s1768_s20 + $0x50] sm:$0xff]   ;;  %v1812_v38 = vshrl.u32 %v847_v37, 7  ;;  %v1816_v40 = vstv %s1356_s11 }
  0x30   : > { %1420 = vmatprep.subr.bf16.mxu0 %v1555_v18  ;;  %1497 = vmatprep.subr.bf16.mxu1 %v1555_v18  ;;  %v1563_v27 = vld [vmem:[%s1768_s20 + $0x18] sm:$0xff]   ;;  %v1565_v29 = vld [vmem:[%s1768_s20 + $0x20] sm:$0xff]   ;;  %v1567_v31 = vld [vmem:[%s1768_s20 + $0x28] sm:$0xff]  }
  0x31   : > { %1424 = vmatprep.mubr.msk.bf16.mxu0 %vm600_vm0, %v1557_v20  ;;  %1440 = vmatprep.mubr.msk.bf16.mxu1 %vm600_vm0, %v1558_v21  ;;  %v1564_v28 = vld [vmem:[%s1768_s20 + $0x58] sm:$0xff]   ;;  %v1566_v30 = vld [vmem:[%s1768_s20 + $0x60] sm:$0xff]   ;;  %v1568_v32 = vld [vmem:[%s1768_s20 + $0x68] sm:$0xff]   ;;  %v850_v39 = vadd.s32 16, %v1812_v38  ;;  %v851_v41 = vadd.s32 24, %v1812_v38  ;;  %v849_v42 = vadd.s32 8, %v1812_v38  ;;  %v865_v44 = vadd.s32 %v1816_v40, %v1812_v38 }
  0x32   : > { %v1569_v33 = vld [vmem:[%s1768_s20 + $0x30] sm:$0xff]   ;;  %v1571_v35 = vld [vmem:[%s1768_s20 + $0x38] sm:$0xff]   ;;  %v854_v47 = vadd.s32 48, %v1812_v38  ;;  %v852_v48 = vadd.s32 32, %v1812_v38  ;;  %v853_v49 = vadd.s32 40, %v1812_v38  ;;  %v855_v57 = vadd.s32 56, %v1812_v38 }
  0x33   : > { %1421 = vmatpush3.bf16.msra.mxu0 %v1555_v18  ;;  %1500 = vmatpush3.bf16.msra.mxu1 %v1555_v18  ;;  %v1570_v34 = vld [vmem:[%s1768_s20 + $0x70] sm:$0xff]   ;;  %v1572_v36 = vld [vmem:[%s1768_s20 + $0x78] sm:$0xff]   ;;  %v1821_v43 = vadd.s32 %v1816_v40, %v850_v39  ;;  %v1826_v45 = vadd.s32 %v1816_v40, %v851_v41  ;;  %v866_v46 = vadd.s32 %v1816_v40, %v849_v42  ;;  %vm881_vm3 = vcmp.lt.s32.totalorder %v865_v44, 256 }
  0x34   : > { %1502 = vmatprep.subr.msk.bf16.mxu0 %vm649_vm1, %v1556_v19  ;;  %1503 = vmatprep.subr.msk.bf16.mxu1 %vm649_vm1, %v1556_v19  ;;  %v1835_v50 = vld [vmem:[%s2073_s2] ss:$0 sm:$0xff]  ;;  %v1840_v53 = vadd.s32 %v1816_v40, %v854_v47  ;;  %v1843_v56 = vadd.s32 %v1816_v40, %v852_v48  ;;  %v1847_v58 = vadd.s32 %v1816_v40, %v853_v49  ;;  %v858_v59 = vadd.s32 80, %v1812_v38 }
  0x35   : > { %vm883_vm2 = vcmp.lt.s32.totalorder %v1821_v43, 256  ;;  %vm884_vm4 = vcmp.lt.s32.totalorder %v1826_v45, 256  ;;  %vm882_vm5 = vcmp.lt.s32.totalorder %v866_v46, 256  ;;  %v856_v6 = vadd.s32 64, %v1812_v38 }
  0x36   : > { %v859_v7 = vadd.s32 88, %v1812_v38  ;;  %vm885_vm6 = vcmp.lt.s32.totalorder %v1843_v56, 256  ;;  %v1862_v12 = vadd.s32 %v1816_v40, %v855_v57  ;;  %v1865_v13 = vadd.s32 %v1816_v40, %v858_v59 }
  0x37   : > { %1423 = vmatpush3.bf16.msra.mxu0 %v651_v22  ;;  %1501 = vmatpush3.bf16.msra.mxu1 %v651_v22  ;;  %v857_v14 = vadd.s32 72, %v1812_v38  ;;  %v1869_v21 = vadd.s32 %v1816_v40, %v856_v6  ;;  %vm886_vm7 = vcmp.lt.s32.totalorder %v1847_v58, 256  ;;  %vm887_vm8 = vcmp.lt.s32.totalorder %v1840_v53, 256 }
  0x38   : > { %v1872_v22 = vadd.s32 %v1816_v40, %v859_v7  ;;  %vm888_vm9 = vcmp.lt.s32.totalorder %v1862_v12, 256  ;;  %v1912_v56 = vadd.s32 120, %v1812_v38  ;;  %vm891_vm12 = vcmp.lt.s32.totalorder %v1865_v13, 256 }
  0x39   : > { %vm889_vm10 = vcmp.lt.s32.totalorder %v1869_v21, 256 }
  0x3a   : > { %1425 = vmatmul.mubr.msk.bf16.vlgmr.msra.gmra.mrb[0].mxu0 %vm600_vm0, %v1559_v23  ;;  %1441 = vmatmul.mubr.msk.bf16.vlgmr.msra.gmra.mrb[0].mxu1 %vm600_vm0, %v1560_v24  ;;  %vm892_vm13 = vcmp.lt.s32.totalorder %v1872_v22, 256 }
  0x3b   : > { %1428 = vmatprep.mubr.msk.bf16.mxu0 %vm600_vm0, %v1561_v25  ;;  %1444 = vmatprep.mubr.msk.bf16.mxu1 %vm600_vm0, %v1562_v26 }
  0x42   : > { %1429 = vmatmul.mubr.msk.bf16.gmra.mrb[4].mxu0 %vm600_vm0, %v1563_v27  ;;  %1445 = vmatmul.mubr.msk.bf16.gmra.mrb[4].mxu1 %vm600_vm0, %v1564_v28 }
  0x43   : > { %1432 = vmatprep.mubr.msk.bf16.mxu0 %vm600_vm0, %v1565_v29  ;;  %1448 = vmatprep.mubr.msk.bf16.mxu1 %vm600_vm0, %v1566_v30 }
  0x4a   : > { %1433 = vmatmul.mubr.msk.bf16.gmra.mrb[8].mxu0 %vm600_vm0, %v1567_v31  ;;  %1449 = vmatmul.mubr.msk.bf16.gmra.mrb[8].mxu1 %vm600_vm0, %v1568_v32 }
  0x4b   : > { %1436 = vmatprep.mubr.msk.bf16.mxu0 %vm600_vm0, %v1569_v33  ;;  %1452 = vmatprep.mubr.msk.bf16.mxu1 %vm600_vm0, %v1570_v34  ;;  %v1880_v33 = vadd.s32 %v1816_v40, %v857_v14  ;;  %v862_v34 = vadd.s32 112, %v1812_v38 }
  0x4d   : > { %vm890_vm11 = vcmp.lt.s32.totalorder %v1880_v33, 256 }
  0x52   : > { %1437 = vmatmul.mubr.msk.bf16.gmra.mrb[12].mxu0 %vm600_vm0, %v1571_v35  ;;  %1453 = vmatmul.mubr.msk.bf16.gmra.mrb[12].mxu1 %vm600_vm0, %v1572_v36 }
 0x10d   : > { %v1426_v51 = vpop.f32.mrb[0].mxu0  ;;  %v1442_v52 = vpop.f32.mrb[0].mxu1 }
 0x10e   : > { %v687_v54 = vpop.f32.mrb[1].mxu0  ;;  %v751_v55 = vpop.f32.mrb[1].mxu1  ;;  %v696_v60 = vadd.f32 %v1426_v51, %v1835_v50  ;;  %v760_v61 = vadd.f32 %v1442_v52, %v1835_v50 }
 0x10f   : > { %v688_v62 = vadd.f32 %v1835_v50, %v687_v54  ;;  %v752_v63 = vadd.f32 %v1835_v50, %v751_v55  ;;  %v1427_v0 = vpop.f32.mrb[2].mxu0  ;;  %v1443_v1 = vpop.f32.mrb[2].mxu1 }
 0x110   : > { %v699_v2 = vadd.f32 %v1427_v0, %v1835_v50  ;;  %v763_v3 = vadd.f32 %v1443_v1, %v1835_v50  ;;  %v690_v4 = vpop.f32.mrb[3].mxu0  ;;  %v754_v5 = vpop.f32.mrb[3].mxu1  ;;  %v816_v15 = vmax.f32 %v696_v60, 0.0  ;;  %v832_v16 = vmax.f32 %v760_v61, 0.0 }
 0x111   : > { %v814_v8 = vmax.f32 %v688_v62, 0.0  ;;  %v830_v9 = vmax.f32 %v752_v63, 0.0  ;;  %v691_v10 = vadd.f32 %v1835_v50, %v690_v4  ;;  %v755_v11 = vadd.f32 %v1835_v50, %v754_v5 }
 0x112   : > { %v817_v19 = vmax.f32 %v699_v2, 0.0  ;;  %v833_v20 = vmax.f32 %v763_v3, 0.0  ;;  %v931_v35 = vsel %vm883_vm2, %v816_v15, 0.0  ;;  %v947_v36 = vsel %vm883_vm2, %v832_v16, 0.0 }
 0x113   : > { %v815_v17 = vmax.f32 %v691_v10, 0.0  ;;  %v831_v18 = vmax.f32 %v755_v11, 0.0  ;;  %v929_v23 = vsel %vm881_vm3, %v814_v8, 0.0  ;;  %v945_v24 = vsel %vm881_vm3, %v830_v9, 0.0 }
 0x114   : > { %v932_v44 = vsel %vm884_vm4, %v817_v19, 0.0  ;;  %v948_v46 = vsel %vm884_vm4, %v833_v20, 0.0  ;;  %v860_v63 = vadd.s32 96, %v1812_v38  ;;  %v1909_v8 = vadd.s32 %v1816_v40, %v862_v34 }
 0x115   : > { %v930_v25 = vsel %vm882_vm5, %v815_v17, 0.0  ;;  %v946_v26 = vsel %vm882_vm5, %v831_v18, 0.0  ;;  %v1430_v27 = vpop.f32.mrb[4].mxu0  ;;  %v1446_v28 = vpop.f32.mrb[4].mxu1  ;;  %vm1006_vm2 = vcmask 1041409   ;;  %vm1661_vm3 = vmmov (!%p1357_p10), 0  }
 0x116   : > { %v962_v29 = vadd.f32 %v930_v25, %v929_v23  ;;  %v983_v30 = vadd.f32 %v946_v26, %v945_v24  ;;  %v703_v31 = vpop.f32.mrb[5].mxu0  ;;  %v767_v32 = vpop.f32.mrb[5].mxu1  ;;  %v712_v51 = vadd.f32 %v1430_v27, %v1835_v50  ;;  %v776_v52 = vadd.f32 %v1446_v28, %v1835_v50 }
 0x117   : > { %v704_v37 = vadd.f32 %v1835_v50, %v703_v31  ;;  %v768_v39 = vadd.f32 %v1835_v50, %v767_v32  ;;  %v1431_v41 = vpop.f32.mrb[6].mxu0  ;;  %v1447_v42 = vpop.f32.mrb[6].mxu1  ;;  %v1918_v23 = vadd.s32 %v1816_v40, %v860_v63  ;;  %v861_v24 = vadd.s32 104, %v1812_v38 }
 0x118   : > { %v963_v47 = vadd.f32 %v962_v29, %v931_v35  ;;  %v984_v48 = vadd.f32 %v983_v30, %v947_v36  ;;  %v706_v43 = vpop.f32.mrb[7].mxu0  ;;  %v770_v49 = vpop.f32.mrb[7].mxu1  ;;  %v715_v60 = vadd.f32 %v1431_v41, %v1835_v50  ;;  %v779_v61 = vadd.f32 %v1447_v42, %v1835_v50 }
 0x119   : > { %v818_v54 = vmax.f32 %v704_v37, 0.0  ;;  %v834_v55 = vmax.f32 %v768_v39, 0.0  ;;  %v707_v2 = vadd.f32 %v1835_v50, %v706_v43  ;;  %v771_v3 = vadd.f32 %v1835_v50, %v770_v49 }
 0x11a   : > { %v964_v57 = vadd.f32 %v963_v47, %v932_v44  ;;  %v985_v59 = vadd.f32 %v984_v48, %v948_v46  ;;  %v820_v4 = vmax.f32 %v712_v51, 0.0  ;;  %v836_v5 = vmax.f32 %v776_v52, 0.0 }
 0x11b   : > { %v933_v45 = vsel %vm885_vm6, %v818_v54, 0.0  ;;  %v949_v62 = vsel %vm885_vm6, %v834_v55, 0.0  ;;  %v821_v9 = vmax.f32 %v715_v60, 0.0  ;;  %v837_v10 = vmax.f32 %v779_v61, 0.0 }
 0x11c   : > { %v965_v0 = vadd.f32 %v964_v57, %v933_v45  ;;  %v986_v1 = vadd.f32 %v985_v59, %v949_v62  ;;  %v819_v11 = vmax.f32 %v707_v2, 0.0  ;;  %v835_v14 = vmax.f32 %v771_v3, 0.0 }
 0x11d   : > { %v1434_v6 = vpop.f32.mrb[8].mxu0  ;;  %v1450_v7 = vpop.f32.mrb[8].mxu1  ;;  %v935_v38 = vsel %vm887_vm8, %v820_v4, 0.0  ;;  %v951_v36 = vsel %vm887_vm8, %v836_v5, 0.0  ;;  %v936_v58 = vsel %vm888_vm9, %v821_v9, 0.0  ;;  %v952_v37 = vsel %vm888_vm9, %v837_v10, 0.0 }
 0x11e   : > { %v719_v15 = vpop.f32.mrb[9].mxu0  ;;  %v783_v16 = vpop.f32.mrb[9].mxu1  ;;  %v934_v25 = vsel %vm886_vm7, %v819_v11, 0.0  ;;  %v950_v26 = vsel %vm886_vm7, %v835_v14, 0.0  ;;  %v728_v27 = vadd.f32 %v1434_v6, %v1835_v50  ;;  %v792_v28 = vadd.f32 %v1450_v7, %v1835_v50 }
 0x11f   : > { %v720_v17 = vadd.f32 %v1835_v50, %v719_v15  ;;  %v784_v18 = vadd.f32 %v1835_v50, %v783_v16  ;;  %v1435_v19 = vpop.f32.mrb[10].mxu0  ;;  %v1451_v20 = vpop.f32.mrb[10].mxu1  ;;  %v966_v31 = vadd.f32 %v965_v0, %v934_v25  ;;  %v987_v32 = vadd.f32 %v986_v1, %v950_v26 }
 0x120   : > { %v722_v29 = vpop.f32.mrb[11].mxu0  ;;  %v786_v30 = vpop.f32.mrb[11].mxu1  ;;  %v731_v42 = vadd.f32 %v1435_v19, %v1835_v50  ;;  %v795_v44 = vadd.f32 %v1451_v20, %v1835_v50  ;;  %v824_v43 = vmax.f32 %v728_v27, 0.0  ;;  %v840_v49 = vmax.f32 %v792_v28, 0.0 }
 0x121   : > { %v822_v34 = vmax.f32 %v720_v17, 0.0  ;;  %v838_v35 = vmax.f32 %v784_v18, 0.0  ;;  %v967_v39 = vadd.f32 %v966_v31, %v935_v38  ;;  %v988_v41 = vadd.f32 %v987_v32, %v951_v36 }
 0x122   : > { %v723_v53 = vadd.f32 %v1835_v50, %v722_v29  ;;  %v787_v48 = vadd.f32 %v1835_v50, %v786_v30  ;;  %vm893_vm14 = vcmp.lt.s32.totalorder %v1918_v23, 256  ;;  %v878_v61 = vadd.s32 %v1816_v40, %v861_v24 }
 0x123   : > { %v937_v46 = vsel %vm889_vm10, %v822_v34, 0.0  ;;  %v953_v47 = vsel %vm889_vm10, %v838_v35, 0.0  ;;  %v968_v12 = vadd.f32 %v967_v39, %v936_v58  ;;  %v989_v51 = vadd.f32 %v988_v41, %v952_v37 }
 0x124   : > { %v823_v55 = vmax.f32 %v723_v53, 0.0  ;;  %v839_v57 = vmax.f32 %v787_v48, 0.0  ;;  %v825_v62 = vmax.f32 %v731_v42, 0.0  ;;  %v841_v63 = vmax.f32 %v795_v44, 0.0 }
 0x125   : > { %v1438_v52 = vpop.f32.mrb[12].mxu0  ;;  %v1454_v54 = vpop.f32.mrb[12].mxu1  ;;  %v969_v21 = vadd.f32 %v968_v12, %v937_v46  ;;  %v990_v45 = vadd.f32 %v989_v51, %v953_v47  ;;  %v939_v9 = vsel %vm891_vm12, %v824_v43, 0.0  ;;  %v955_v10 = vsel %vm891_vm12, %v840_v49, 0.0 }
 0x126   : > { %v735_v59 = vpop.f32.mrb[13].mxu0  ;;  %v799_v60 = vpop.f32.mrb[13].mxu1  ;;  %v938_v2 = vsel %vm890_vm11, %v823_v55, 0.0  ;;  %v954_v3 = vsel %vm890_vm11, %v839_v57, 0.0  ;;  %v744_v15 = vadd.f32 %v1438_v52, %v1835_v50  ;;  %v808_v16 = vadd.f32 %v1454_v54, %v1835_v50 }
 0x127   : > { %v1439_v0 = vpop.f32.mrb[14].mxu0  ;;  %v1455_v1 = vpop.f32.mrb[14].mxu1  ;;  %v736_v4 = vadd.f32 %v1835_v50, %v735_v59  ;;  %v800_v5 = vadd.f32 %v1835_v50, %v799_v60  ;;  %v970_v11 = vadd.f32 %v969_v21, %v938_v2  ;;  %v991_v14 = vadd.f32 %v990_v45, %v954_v3  ;;  %v961_v21 = vld [vmem:[#allocation2] sm:$0x3]  ;;  %v1574_v2 = vld [vmem:[%s2074_s3 + $0x8] sm:$0xff] (!%p1357_p10)   ;;  %v1575_v3 = vld [vmem:[%s2074_s3 + $0x10] sm:$0xff] (!%p1357_p10)  }
 0x128   : > { %v738_v6 = vpop.f32.mrb[15].mxu0  ;;  %v802_v7 = vpop.f32.mrb[15].mxu1  ;;  %v940_v18 = vsel %vm892_vm13, %v825_v62, 0.0  ;;  %v956_v19 = vsel %vm892_vm13, %v841_v63, 0.0  ;;  %v747_v26 = vadd.f32 %v1439_v0, %v1835_v50  ;;  %v811_v27 = vadd.f32 %v1455_v1, %v1835_v50  ;;  %v1573_v0 = vld [vmem:[%s2074_s3] sm:$0xff] (!%p1357_p10)  }
 0x129   : > { %v826_v33 = vmax.f32 %v736_v4, 0.0  ;;  %v842_v17 = vmax.f32 %v800_v5, 0.0  ;;  %v971_v20 = vadd.f32 %v970_v11, %v939_v9  ;;  %v992_v24 = vadd.f32 %v991_v14, %v955_v10  ;;  %v1581_v4 = vld [vmem:[%s2076_s5] sm:$0xff] (!%p1357_p10)   ;;  %v1576_v5 = vld [vmem:[%s2074_s3 + $0x18] sm:$0xff] (!%p1357_p10)   ;;  %v1583_v9 = vld [vmem:[%s2076_s5 + $0x10] sm:$0xff] (!%p1357_p10)  }
 0x12a   : > { %v739_v30 = vadd.f32 %v1835_v50, %v738_v6  ;;  %v803_v31 = vadd.f32 %v1835_v50, %v802_v7  ;;  %v828_v22 = vmax.f32 %v744_v15, 0.0  ;;  %v844_v32 = vmax.f32 %v808_v16, 0.0  ;;  %v1582_v6 = vld [vmem:[%s2076_s5 + $0x8] sm:$0xff] (!%p1357_p10)   ;;  %v1577_v7 = vld [vmem:[%s2074_s3 + $0x20] sm:$0xff] (!%p1357_p10)   ;;  %v1584_v11 = vld [vmem:[%s2076_s5 + $0x18] sm:$0xff] (!%p1357_p10)  }
 0x12b   : > { %v941_v13 = vsel %vm893_vm14, %v826_v33, 0.0  ;;  %v957_v25 = vsel %vm893_vm14, %v842_v17, 0.0  ;;  %v972_v28 = vadd.f32 %v971_v20, %v940_v18  ;;  %v993_v29 = vadd.f32 %v992_v24, %v956_v19  ;;  %v1578_v10 = vld [vmem:[%s2074_s3 + $0x28] sm:$0xff] (!%p1357_p10)   ;;  %v1579_v14 = vld [vmem:[%s2074_s3 + $0x30] sm:$0xff] (!%p1357_p10)   ;;  %v1585_v16 = vld [vmem:[%s2076_s5 + $0x20] sm:$0xff] (!%p1357_p10)  }
 0x12c   : > { %v880_v34 = vadd.s32 %v1816_v40, %v1912_v56  ;;  %vm894_vm15 = vcmp.lt.s32.totalorder %v878_v61, 256  ;;  %v827_v23 = vmax.f32 %v739_v30, 0.0  ;;  %v843_v36 = vmax.f32 %v803_v31, 0.0  ;;  %v1580_v17 = vld [vmem:[%s2074_s3 + $0x38] sm:$0xff] (!%p1357_p10)   ;;  %v1586_v18 = vld [vmem:[%s2076_s5 + $0x28] sm:$0xff] (!%p1357_p10)   ;;  %v1587_v20 = vld [vmem:[%s2076_s5 + $0x30] sm:$0xff] (!%p1357_p10)  }
 0x12d   : > { %v973_v35 = vadd.f32 %v972_v28, %v941_v13  ;;  %v994_v38 = vadd.f32 %v993_v29, %v957_v25  ;;  %vm895_vm0 = vcmp.lt.s32.totalorder %v1909_v8, 256  ;;  %v829_v58 = vmax.f32 %v747_v26, 0.0  ;;  %v1588_v24 = vld [vmem:[%s2076_s5 + $0x38] sm:$0xff] (!%p1357_p10)   ;;  %v1358_v13 = vld [vmem:[%s2075_s4] ss:$0 sm:$0xff] (!%p1357_p10) }
 0x12e   : > { %v845_v37 = vmax.f32 %v811_v27, 0.0  ;;  %v942_v39 = vsel %vm894_vm15, %v827_v23, 0.0  ;;  %v958_v41 = vsel %vm894_vm15, %v843_v36, 0.0  ;;  %vm896_vm1 = vcmp.lt.s32.totalorder %v880_v34, 256 }
 0x12f   : > { %v974_v42 = vadd.f32 %v973_v35, %v942_v39  ;;  %v995_v44 = vadd.f32 %v994_v38, %v958_v41  ;;  %v943_v50 = vsel %vm895_vm0, %v828_v22, 0.0  ;;  %v959_v46 = vsel %vm895_vm0, %v844_v32, 0.0  ;;  %v1367_v22 = vld [vmem:[%s2077_s6] ss:$0 sm:$0xff] (!%p1357_p10) }
 0x130   : > { %v944_v48 = vsel %vm896_vm1, %v829_v58, 0.0  ;;  %v960_v40 = vsel %vm896_vm1, %v845_v37, 0.0  ;;  %v1660_v1 = vmov (!%p1357_p10), 0.0  }
 0x131   : > { %v975_v47 = vadd.f32 %v974_v42, %v943_v50  ;;  %v996_v53 = vadd.f32 %v995_v44, %v959_v46  ;;  %1456 = vmatprep.subr.bf16.mxu0 (!%p1357_p10), %v1660_v1  ;;  %1476 = vmatprep.subr.bf16.mxu1 (!%p1357_p10), %v1660_v1 }
 0x132   : > { %1457 = vmatpush3.bf16.msra.mxu0 (!%p1357_p10), %v1573_v0  ;;  %1472 = vmatprep.mubr.msk.bf16.mxu0 (!%p1357_p10), %vm1661_vm3, %v1660_v1 }
 0x133   : > { %v976_v56 = vadd.f32 %v975_v47, %v944_v48  ;;  %v997_v43 = vadd.f32 %v996_v53, %v960_v40  ;;  %1458 = vmatprep.subr.bf16.mxu0 (!%p1357_p10), %v1660_v1  ;;  %1492 = vmatprep.mubr.msk.bf16.mxu1 (!%p1357_p10), %vm1661_vm3, %v1660_v1 }
 0x134   : > { %1477 = vmatpush3.bf16.msra.mxu1 (!%p1357_p10), %v1581_v4 }
 0x135   : > { %v977_v49 = vrot.slane %v976_v56, 4  ;;  %v998_v12 = vrot.slane %v997_v43, 4  ;;  %1478 = vmatprep.subr.bf16.mxu1 (!%p1357_p10), %v1660_v1 }
 0x136   : > { %1459 = vmatpush3.bf16.msra.mxu0 (!%p1357_p10), %v1574_v2 }
 0x137   : > { %v978_v51 = vadd.f32 %v977_v49, %v976_v56  ;;  %v999_v52 = vadd.f32 %v998_v12, %v997_v43  ;;  %1460 = vmatprep.subr.bf16.mxu0 (!%p1357_p10), %v1660_v1 }
 0x138   : > { %1479 = vmatpush3.bf16.msra.mxu1 (!%p1357_p10), %v1582_v6 }
 0x139   : > { %v979_v8 = vrot.slane %v978_v51, 2  ;;  %v1000_v54 = vrot.slane %v999_v52, 2  ;;  %1480 = vmatprep.subr.bf16.mxu1 (!%p1357_p10), %v1660_v1 }
 0x13a   : > { %1461 = vmatpush3.bf16.msra.mxu0 (!%p1357_p10), %v1575_v3 }
 0x13b   : > { %v980_v55 = vadd.f32 %v979_v8, %v978_v51  ;;  %v1001_v57 = vadd.f32 %v1000_v54, %v999_v52  ;;  %1462 = vmatprep.subr.bf16.mxu0 (!%p1357_p10), %v1660_v1 }
 0x13c   : > { %1481 = vmatpush3.bf16.msra.mxu1 (!%p1357_p10), %v1583_v9 }
 0x13d   : > { %v981_v59 = vrot.slane %v980_v55, 1  ;;  %v1002_v60 = vrot.slane %v1001_v57, 1  ;;  %1482 = vmatprep.subr.bf16.mxu1 (!%p1357_p10), %v1660_v1 }
 0x13e   : > { %1014 = sbr.rel (%p1357_p10) target bundleno = 770 (0x302), region = 97  ;;  %1463 = vmatpush3.bf16.msra.mxu0 (!%p1357_p10), %v1576_v5 }
 0x13f   : > { %v982_v61 = vadd.f32 %v981_v59, %v980_v55  ;;  %v1003_v45 = vadd.f32 %v1002_v60, %v1001_v57  ;;  %1464 = vmatprep.subr.bf16.mxu0 (!%p1357_p10), %v1660_v1 }
 0x140   : > { %1483 = vmatpush3.bf16.msra.mxu1 (!%p1357_p10), %v1584_v11 }
 0x141   : > { %v1007_v62 = vsel %vm1006_vm2, %v1003_v45, %v982_v61  ;;  %1484 = vmatprep.subr.bf16.mxu1 (!%p1357_p10), %v1660_v1 }
 0x142   : > { %v1009_v63 = vadd.f32 %v1007_v62, %v961_v21  ;;  %1465 = vmatpush3.bf16.msra.mxu0 (!%p1357_p10), %v1577_v7 }
 0x143   : > { %1466 = vmatprep.subr.bf16.mxu0 (!%p1357_p10), %v1660_v1 }
 0x144   : > { %1010 = vst [vmem:[#allocation2] sm:$0x3] %v1009_v63  ;;  %1485 = vmatpush3.bf16.msra.mxu1 (!%p1357_p10), %v1585_v16 }
 0x145   : > { %1486 = vmatprep.subr.bf16.mxu1 %v1660_v1 }
 0x146   : > { %1467 = vmatpush3.bf16.msra.mxu0 %v1578_v10 }
 0x147   : > { %1468 = vmatprep.subr.bf16.mxu0 %v1660_v1 }
 0x148   : > { %1487 = vmatpush3.bf16.msra.mxu1 %v1586_v18 }
 0x149   : > { %1488 = vmatprep.subr.bf16.mxu1 %v1660_v1 }
 0x14a   : > { %1469 = vmatpush3.bf16.msra.mxu0 %v1579_v14 }
 0x14b   : > { %v1015_v15 = vld [vmem:[#allocation2] sm:$0x3]  ;;  %1470 = vmatprep.subr.bf16.mxu0 %v1660_v1 }
 0x14c   : > { %v1016_v33 = vmul.f32 0.00390625, %v1015_v15  ;;  %1489 = vmatpush3.bf16.msra.mxu1 %v1587_v20 }
 0x14d   : > { %1490 = vmatprep.subr.bf16.mxu1 %v1660_v1 }
 0x14e   : > { %v1017_v19 = vpack.c.bf16 %v1016_v33, %v1016_v33  ;;  %1471 = vmatpush3.bf16.msra.mxu0 %v1580_v17 }
 0x150   : > { %1491 = vmatpush3.bf16.msra.mxu1 %v1588_v24 }
 0x151   : > { %1473 = vmatmul.mubr.bf16.vlgmr.msra.gmra.mrb[0].mxu0 %v1017_v19 }
 0x224   : > { %v1123_v25 = vpop.f32.mrb[0].mxu0 }
 0x225   : > { %v1124_v26 = vadd.f32 %v1358_v13, %v1123_v25  ;;  %v1474_v27 = vpop.f32.mrb[1].mxu0 }
 0x226   : > { %v1126_v28 = vpop.f32.mrb[2].mxu0 }
 0x227   : > { %v1129_v29 = vmax.f32 %v1124_v26, 0.0  ;;  %v1475_v30 = vpop.f32.mrb[3].mxu0 }
 0x229   : > { %v1130_v31 = vpack.c.bf16 %v1129_v29, %v1129_v29 }
 0x22b   : > { %1493 = vmatmul.mubr.bf16.vlgmr.msra.gmra.mrb[0].mxu1 %v1130_v31 }
 0x2fe   : > { %v1236_v32 = vpop.f32.mrb[0].mxu1 }
 0x2ff   : > { %v1237_v34 = vadd.f32 %v1367_v22, %v1236_v32  ;;  %v1494_v35 = vpop.f32.mrb[1].mxu1 }
 0x300   : > { %v1239_v38 = vpop.f32.mrb[2].mxu1 }
 0x301   : > { %1242 = vst [vmem:[#allocation4] sm:$0x3] %v1237_v34  ;;  %v1495_v23 = vpop.f32.mrb[3].mxu1 }
 0x302 PF: > { %p2030_p11 = scmp.eq.s32.totalorder %s1311_s29, 1  ;;  %s1662_s17 = smov [#allocation4]  }
 0x303   : > { %s1252_s18 = sshll.u32 %s1662_s17, 4  ;;  %s1253_s18 = int_to_ptr.vmem [resolvable:$true] %s1252_s18 }
 0x304   : > { %s1589_s26 = scalar_lea.vmem %s1253_s18, 32  ;;  %p1596_p1 = scmp.lt.s32.totalorder %s1253_s18, %s1253_s18 }
 0x305   : > { %p1590_p12 = scmp.ne.s32.totalorder %s1253_s18, %s1589_s26  ;;  %p1597_p2 = scmp.lt.s32.totalorder %s1589_s26, %s1589_s26 }
 0x307   : > { %p1591_p13 = pnand %p1590_p12, %p2030_p11  ;;  %p1598_p3 = por %p1597_p2, %p1596_p1 }
 0x309   : > { %p1592_p0 = pneg %p1591_p13 }
 0x30b   : > { %p1599_p4 = pnand %p1598_p3, %p1592_p0 }
 0x30d   : > { %1602 = shalt.err (!%p1599_p4)
}
 0x30e   : > { %s1603_s29 = scalar_lea.hbm %s2078_s7, 32 }
 0x30f   : > { %p1604_p5 = scmp.ne.s32.totalorder %s2078_s7, %s1603_s29  ;;  %p1609_p8 = scmp.lt.u32.totalorder %s1603_s29, %s2078_s7 }
 0x311   : > { %p1605_p6 = pnand %p1604_p5, %p2030_p11 }
 0x313   : > { %p1606_p7 = pneg %p1605_p6 }
 0x315   : > { %p1611_p9 = pnand %p1609_p8, %p1606_p7 }
 0x317   : > { %1614 = shalt.err (!%p1611_p9)
}
 0x318   : > { %1505 = dma.vmem_to_hbm [thread:$0]  (%p2030_p11), %s1253_s18, 32, %s2078_s7, [#allocation5]  }
 0x319   : > { %1636 = dma.done.wait (%p2030_p11), [#allocation5], 32  }
 0x31a   : > { %1638 = vsyncadd (%p2030_p11), [#allocation5], 4294967264 }
 0x31b PF: > { %s18_s28 = sadd.s32 1, %s1657_s28   ;;  %s2080_s24 = smov %s1645_s25 }
 0x31c   : > { %p15_p10 = scmp.ge.s32.totalorder %s18_s28, 4   ;;  %s2081_s25 = smov %s1739_s10 }
 0x31d   : > { %s2082_s26 = smov %s1653_s27  ;;  %s2083_s27 = smov %s2085_s30 }
 0x31e   :  { %17 = sbr.rel (!%p15_p10) target bundleno = 3 (0x3), region = 130 }
 0x325   :  { %1265 = vsyncpa [#allocation5], 1 }
 0x326   :  { %1267 = vsyncpa [#allocation5 + $0x1], 1 }

</bundles_post_ra>
